<compile_context>
chip_gen: v7x
topology: tpu7x:2x2x1
jax: 0.10.0
libtpu: 0.0.40
codegen_flags: <defaults>
</compile_context>

<pallas_src>
import jax
import jax.numpy as jnp
from jax.experimental import pallas as pl
from jax.experimental.pallas import tpu as pltpu

BN_EPS = 1e-5
MAX_TILE_B = 2048  # rows; a 2048 x in_f f32 x-tile is well inside VMEM on all gens


# ----------------------------------------------------------------------------
# Helpers
# ----------------------------------------------------------------------------
def _round_up(n, m):
    return ((n + m - 1) // m) * m


def _full_spec(shape):
    """Whole-array block (always legal: block dims == full array dims)."""
    ndim = len(shape)
    return pl.BlockSpec(shape, lambda *_: (0,) * ndim)


def _choose_tile_b(batch):
    """Batch tiling: one big tile when possible; an even tile count for v7x."""
    if batch < 8:
        return batch                       # block == full sublane dim -> legal
    if batch <= MAX_TILE_B:
        return _round_up(batch, 8)         # single tile; partial rows are masked
    # Large batch: smallest even number of near-equal tiles that fit MAX_TILE_B.
    pairs = pl.cdiv(batch, 2 * MAX_TILE_B)
    return _round_up(pl.cdiv(batch, 2 * pairs), 8)


# ----------------------------------------------------------------------------
# One-time parameter prep: fold eval-mode BatchNorm into each Linear
# ----------------------------------------------------------------------------
def fold_batchnorm(params, final):
    """Returns (hidden, head) with BN folded; call ONCE, not per forward."""
    hidden = []
    for p in params:
        scale = p["gamma"] * jax.lax.rsqrt(p["var"] + BN_EPS)     # (1, out)
        w_f = p["w"] * scale                                      # (prev, out)
        b_f = (p["b"] - p["mean"]) * scale + p["beta"]            # (1, out)
        hidden.append((w_f, b_f))
    head = (final["w"].T, final["b"])                             # (1, prev), (1, 1)
    return tuple(hidden), head


# ----------------------------------------------------------------------------
# Fused kernel: all hidden layers + 1-unit head in a single pallas_call
# ----------------------------------------------------------------------------
def _make_fused_kernel(n_hidden):
    def kernel(x_ref, *refs):
        # refs = [w0, b0, w1, b1, ..., w_head_row, b_head, o_ref]
        o_ref = refs[-1]
        b_head_ref = refs[-2]
        w_head_ref = refs[-3]

        h = x_ref[...]                        # (tile_b, in_f) f32
        for i in range(n_hidden):             # unrolled at trace time
            w = refs[2 * i][...]              # (prev, out), BN pre-folded
            b = refs[2 * i + 1][...]          # (1, out)
            y = jnp.dot(h, w, preferred_element_type=jnp.float32) + b
            h = jnp.maximum(y, 0.0)
        # TODO(synk): eval-mode semantics only (Dropout = identity, BN running
        # stats); training-mode batch statistics / dropout masks not reproduced.

        # Head Linear(prev, 1): VPU multiply + XLU lane reduce, then write the
        # result as a lane-dense (1, tile_b) row (no masked 1-lane stores).
        row = jnp.sum(h * w_head_ref[...], axis=-1, keepdims=True).T  # (1, tile_b)
        row = row + b_head_ref[...]
        o_ref[...] = row.reshape(o_ref.shape).astype(o_ref.dtype)

    return kernel


# ----------------------------------------------------------------------------
# Forward: a single pallas_call (params already folded)
# ----------------------------------------------------------------------------
@jax.jit
def melody_net_forward(x, hidden, head):
    batch, in_f = x.shape
    tile_b = _choose_tile_b(batch)
    nb = pl.cdiv(batch, tile_b)

    inputs = [x]
    in_specs = [pl.BlockSpec((tile_b, in_f), lambda i: (i, 0))]
    for w, b in hidden:
        inputs += [w, b]
        in_specs += [_full_spec(w.shape), _full_spec(b.shape)]
    w_head, b_head = head
    inputs += [w_head, b_head]
    in_specs += [_full_spec(w_head.shape), _full_spec(b_head.shape)]

    out = pl.pallas_call(
        _make_fused_kernel(len(hidden)),
        out_shape=jax.ShapeDtypeStruct((nb, 1, tile_b), jnp.float32),
        grid=(nb,),
        in_specs=in_specs,
        out_specs=pl.BlockSpec((1, 1, tile_b), lambda i: (i, 0, 0)),
        compiler_params=pltpu.CompilerParams(
            dimension_semantics=("parallel",)),
    )(*inputs)

    # (nb, 1, tile_b) -> (batch, 1); trailing throwaway rows (partial tile) cut.
    return out.reshape(nb * tile_b)[:batch].reshape(batch, 1)


# ----------------------------------------------------------------------------
# Parameter init (shapes match nn.Linear / nn.BatchNorm1d) + pure-JAX reference
# ----------------------------------------------------------------------------
def init_params(key, input_size, layer_sizes):
    params = []
    prev = input_size
    for size in layer_sizes:
        key, kw, kb, kg, kbeta, km, kv = jax.random.split(key, 7)
        scale = 1.0 / jnp.sqrt(prev)
        params.append(dict(
            w=jax.random.uniform(kw, (prev, size), jnp.float32, -scale, scale),
            b=jax.random.uniform(kb, (1, size), jnp.float32, -scale, scale),
            gamma=1.0 + 0.1 * jax.random.normal(kg, (1, size), jnp.float32),
            beta=0.1 * jax.random.normal(kbeta, (1, size), jnp.float32),
            mean=0.1 * jax.random.normal(km, (1, size), jnp.float32),
            var=jax.random.uniform(kv, (1, size), jnp.float32, 0.5, 1.5),
        ))
        prev = size
    key, kw, kb = jax.random.split(key, 3)
    scale = 1.0 / jnp.sqrt(prev)
    final = dict(
        w=jax.random.uniform(kw, (prev, 1), jnp.float32, -scale, scale),
        b=jax.random.uniform(kb, (1, 1), jnp.float32, -scale, scale),
    )
    return params, final


def melody_net_reference(x, params, final):
    h = x
    for p in params:
        y = h @ p["w"] + p["b"]
        y = (y - p["mean"]) * jax.lax.rsqrt(p["var"] + BN_EPS) * p["gamma"] + p["beta"]
        h = jnp.maximum(y, 0.0)
    return h @ final["w"] + final["b"]


# ----------------------------------------------------------------------------
if __name__ == "__main__":
    key = jax.random.PRNGKey(0)
    key, kx, kp, kx2 = jax.random.split(key, 4)

    # Small shapes consistent with the module (Optuna would pick layer_sizes).
    batch = 8
    input_size = 32
    layer_sizes = [64, 32]        # n_layers + 1 hidden blocks

    x = jax.random.normal(kx, (batch, input_size), jnp.float32)
    params, final = init_params(kp, input_size, layer_sizes)

    # One-time BN fold (hoisted out of the per-call forward).
    hidden, head = fold_batchnorm(params, final)

    out = melody_net_forward(x, hidden, head)
    out = jax.block_until_ready(out)
    ref = melody_net_reference(x, params, final)
    assert out.shape == (batch, 1), out.shape
    assert jnp.allclose(out, ref, atol=1e-4, rtol=1e-4), (out, ref)

    # Also exercise a batch that is not a multiple of 8 (partial batch tile).
    batch2 = 20
    x2 = jax.random.normal(kx2, (batch2, input_size), jnp.float32)
    out2 = jax.block_until_ready(melody_net_forward(x2, hidden, head))
    ref2 = melody_net_reference(x2, params, final)
    assert out2.shape == (batch2, 1), out2.shape
    assert jnp.allclose(out2, ref2, atol=1e-4, rtol=1e-4), (out2, ref2)

    print("KERNEL_OK")
</pallas_src>

<mosaic_0001>
module attributes {stable_mosaic.version = 11 : i64} {
  func.func @kernel(%arg0: i32, %arg1: memref<8x32xf32, #tpu.memory_space<vmem>>, %arg2: memref<32x64xf32, #tpu.memory_space<vmem>>, %arg3: memref<1x64xf32, #tpu.memory_space<vmem>>, %arg4: memref<64x32xf32, #tpu.memory_space<vmem>>, %arg5: memref<1x32xf32, #tpu.memory_space<vmem>>, %arg6: memref<1x32xf32, #tpu.memory_space<vmem>>, %arg7: memref<1x1xf32, #tpu.memory_space<vmem>>, %arg8: memref<1x1x8xf32, #tpu.memory_space<vmem>>) attributes {dimension_semantics = [#tpu.dimension_semantics<parallel>], iteration_bounds = array<i64: 1>, scalar_prefetch = 0 : i64, scratch_operands = 0 : i64, tpu.core_type = #tpu.core_type<tc>, window_params = [{transform_indices = @transform_0, window_bounds = array<i64: 8, 32>}, {pipeline_mode = #tpu.pipeline_mode<synchronous>, transform_indices = @transform_1, window_bounds = array<i64: 32, 64>}, {pipeline_mode = #tpu.pipeline_mode<synchronous>, transform_indices = @transform_2, window_bounds = array<i64: 1, 64>}, {pipeline_mode = #tpu.pipeline_mode<synchronous>, transform_indices = @transform_3, window_bounds = array<i64: 64, 32>}, {pipeline_mode = #tpu.pipeline_mode<synchronous>, transform_indices = @transform_4, window_bounds = array<i64: 1, 32>}, {pipeline_mode = #tpu.pipeline_mode<synchronous>, transform_indices = @transform_5, window_bounds = array<i64: 1, 32>}, {pipeline_mode = #tpu.pipeline_mode<synchronous>, transform_indices = @transform_6, window_bounds = array<i64: 1, 1>}, {transform_indices = @transform_7, window_bounds = array<i64: 1, 1, 8>}]} {
    %c0 = arith.constant 0 : index
    %c0_0 = arith.constant 0 : index
    %0 = vector.load %arg1[%c0, %c0_0] : memref<8x32xf32, #tpu.memory_space<vmem>>, vector<8x32xf32>
    %c0_1 = arith.constant 0 : index
    %c0_2 = arith.constant 0 : index
    %1 = vector.load %arg2[%c0_1, %c0_2] : memref<32x64xf32, #tpu.memory_space<vmem>>, vector<32x64xf32>
    %c0_3 = arith.constant 0 : index
    %c0_4 = arith.constant 0 : index
    %2 = vector.load %arg3[%c0_3, %c0_4] : memref<1x64xf32, #tpu.memory_space<vmem>>, vector<1x64xf32>
    %cst = arith.constant dense<0.000000e+00> : vector<8x64xf32>
    %3 = tpu.matmul %0, %1, %cst {dimension_numbers = #tpu.dot_dimension_numbers<[1], [0], [0], [1], [0, 0, 1, 1], [], []>} : vector<8x32xf32>, vector<32x64xf32>, vector<8x64xf32> -> vector<8x64xf32>
    %4 = vector.broadcast %2 : vector<1x64xf32> to vector<8x64xf32>
    %5 = arith.addf %3, %4 : vector<8x64xf32>
    %cst_5 = arith.constant 0.000000e+00 : f32
    %6 = vector.broadcast %cst_5 : f32 to vector<8x64xf32>
    %7 = arith.maximumf %5, %6 : vector<8x64xf32>
    %c0_6 = arith.constant 0 : index
    %c0_7 = arith.constant 0 : index
    %8 = vector.load %arg4[%c0_6, %c0_7] : memref<64x32xf32, #tpu.memory_space<vmem>>, vector<64x32xf32>
    %c0_8 = arith.constant 0 : index
    %c0_9 = arith.constant 0 : index
    %9 = vector.load %arg5[%c0_8, %c0_9] : memref<1x32xf32, #tpu.memory_space<vmem>>, vector<1x32xf32>
    %cst_10 = arith.constant dense<0.000000e+00> : vector<8x32xf32>
    %10 = tpu.matmul %7, %8, %cst_10 {dimension_numbers = #tpu.dot_dimension_numbers<[1], [0], [0], [1], [0, 0, 1, 1], [], []>} : vector<8x64xf32>, vector<64x32xf32>, vector<8x32xf32> -> vector<8x32xf32>
    %11 = vector.broadcast %9 : vector<1x32xf32> to vector<8x32xf32>
    %12 = arith.addf %10, %11 : vector<8x32xf32>
    %cst_11 = arith.constant 0.000000e+00 : f32
    %13 = vector.broadcast %cst_11 : f32 to vector<8x32xf32>
    %14 = arith.maximumf %12, %13 : vector<8x32xf32>
    %c0_12 = arith.constant 0 : index
    %c0_13 = arith.constant 0 : index
    %15 = vector.load %arg6[%c0_12, %c0_13] : memref<1x32xf32, #tpu.memory_space<vmem>>, vector<1x32xf32>
    %16 = vector.broadcast %15 : vector<1x32xf32> to vector<8x32xf32>
    %17 = arith.mulf %14, %16 : vector<8x32xf32>
    %cst_14 = arith.constant dense<0.000000e+00> : vector<8xf32>
    %18 = vector.multi_reduction <add>, %17, %cst_14 [1] : vector<8x32xf32> to vector<8xf32>
    %19 = vector.shape_cast %18 : vector<8xf32> to vector<8x1xf32>
    %20 = tpu.transpose %19, [1, 0] : vector<8x1xf32> -> vector<1x8xf32>
    %c0_15 = arith.constant 0 : index
    %c0_16 = arith.constant 0 : index
    %21 = vector.load %arg7[%c0_15, %c0_16] : memref<1x1xf32, #tpu.memory_space<vmem>>, vector<1x1xf32>
    %22 = vector.broadcast %21 : vector<1x1xf32> to vector<1x8xf32>
    %23 = arith.addf %20, %22 : vector<1x8xf32>
    %24 = vector.shape_cast %23 : vector<1x8xf32> to vector<1x1x8xf32>
    %c0_17 = arith.constant 0 : index
    %c0_18 = arith.constant 0 : index
    %c0_19 = arith.constant 0 : index
    %25 = vector.load %arg8[%c0_17, %c0_18, %c0_19] : memref<1x1x8xf32, #tpu.memory_space<vmem>>, vector<1x1x8xf32>
    tpu.vector_store %arg8[%c0_17, %c0_18, %c0_19], %24 {strides = array<i32>} : memref<1x1x8xf32, #tpu.memory_space<vmem>>, vector<1x1x8xf32>,
    return
  }
  func.func @transform_0(%arg0: i32) -> (i32, i32) {
    %c0_i32 = arith.constant 0 : i32
    %c0_i32_0 = arith.constant 0 : i32
    return %arg0, %c0_i32 : i32, i32
  }
  func.func @transform_1(%arg0: i32) -> (i32, i32) {
    %c0_i32 = arith.constant 0 : i32
    %c0_i32_0 = arith.constant 0 : i32
    %c0_i32_1 = arith.constant 0 : i32
    return %c0_i32, %c0_i32_0 : i32, i32
  }
  func.func @transform_2(%arg0: i32) -> (i32, i32) {
    %c0_i32 = arith.constant 0 : i32
    %c0_i32_0 = arith.constant 0 : i32
    %c0_i32_1 = arith.constant 0 : i32
    return %c0_i32, %c0_i32_0 : i32, i32
  }
  func.func @transform_3(%arg0: i32) -> (i32, i32) {
    %c0_i32 = arith.constant 0 : i32
    %c0_i32_0 = arith.constant 0 : i32
    %c0_i32_1 = arith.constant 0 : i32
    return %c0_i32, %c0_i32_0 : i32, i32
  }
  func.func @transform_4(%arg0: i32) -> (i32, i32) {
    %c0_i32 = arith.constant 0 : i32
    %c0_i32_0 = arith.constant 0 : i32
    %c0_i32_1 = arith.constant 0 : i32
    return %c0_i32, %c0_i32_0 : i32, i32
  }
  func.func @transform_5(%arg0: i32) -> (i32, i32) {
    %c0_i32 = arith.constant 0 : i32
    %c0_i32_0 = arith.constant 0 : i32
    %c0_i32_1 = arith.constant 0 : i32
    return %c0_i32, %c0_i32_0 : i32, i32
  }
  func.func @transform_6(%arg0: i32) -> (i32, i32) {
    %c0_i32 = arith.constant 0 : i32
    %c0_i32_0 = arith.constant 0 : i32
    %c0_i32_1 = arith.constant 0 : i32
    return %c0_i32, %c0_i32_0 : i32, i32
  }
  func.func @transform_7(%arg0: i32) -> (i32, i32, i32) {
    %c0_i32 = arith.constant 0 : i32
    %c0_i32_0 = arith.constant 0 : i32
    %c0_i32_1 = arith.constant 0 : i32
    return %arg0, %c0_i32, %c0_i32_0 : i32, i32, i32
  }
}

</mosaic_0001>

<bundles_post_ra>
// kernel: melody_net_forward.1
= control target key start
LH: loop header
LB: loop body
LE: loop exit
PB: predicated region body
PF: predicated region fallthrough
CT: control target
= control target key end

     0   :  { %s483_s0 = inlined_call_operand.vmem [shape: f32[8,32], index: 0, kind: input, shape index: {}]   ;;  %s484_s1 = inlined_call_operand.vmem [shape: f32[32,64], index: 1, kind: input, shape index: {}]   ;;  %s485_s2 = inlined_call_operand.vmem [shape: f32[1,64], index: 2, kind: input, shape index: {}]   ;;  %s486_s3 = inlined_call_operand.vmem [shape: f32[64,32], index: 3, kind: input, shape index: {}]   ;;  %s487_s4 = inlined_call_operand.vmem [shape: f32[1,32], index: 4, kind: input, shape index: {}]   ;;  %s488_s5 = inlined_call_operand.vmem [shape: f32[1,32], index: 5, kind: input, shape index: {}]   ;;  %s489_s6 = inlined_call_operand.<no memory space> [shape: f32[1,1], index: 6, kind: input, shape index: {}]   ;;  %s490_s7 = inlined_call_operand.hbm [shape: f32[1,1,8], index: 7, kind: output, shape index: {}]  }
   0x1   :  { %v12_v0 = vstv %s489_s6 }
   0x2   :  { %13 = vst [vmem:[#allocation2] sm:$0x1] %v12_v0 }
   0x3   :  { %v30_v1 = vld [vmem:[%s484_s1] sm:$0xff]  ;;  %v31_v2 = vld [vmem:[%s484_s1 + $0x8] sm:$0xff]  ;;  %v32_v3 = vld [vmem:[%s484_s1 + $0x10] sm:$0xff]  ;;  %v373_v4 = vmov 0.0|0.0   ;;  %vm374_vm0 = vmmov 0   ;;  %v375_v7 = vmov 0.0  }
   0x4   :  { %325 = vmatprep.subr.bf16.mxu0 %v373_v4  ;;  %v326_v5 = vpack.c.bf16 %v31_v2, %v30_v1  ;;  %v33_v6 = vld [vmem:[%s484_s1 + $0x18] sm:$0xff]  ;;  %303 = vmatprep.mubr.msk.f32.mxu0 %vm374_vm0, %v375_v7  ;;  %v116_v8 = vld [vmem:[%s486_s3] sm:$0xff]  ;;  %v117_v9 = vld [vmem:[%s486_s3 + $0x8] sm:$0xff] }
   0x5   :  { %331 = vmatprep.subr.bf16.mxu1 %v373_v4  ;;  %v118_v10 = vld [vmem:[%s486_s3 + $0x10] sm:$0xff]  ;;  %v119_v11 = vld [vmem:[%s486_s3 + $0x18] sm:$0xff]  ;;  %322 = vmatprep.mubr.msk.f32.mxu1 %vm374_vm0, %v375_v7  ;;  %v329_v12 = vpack.c.bf16 %v33_v6, %v32_v3  ;;  %v332_v13 = vpack.c.bf16 %v117_v9, %v116_v8 }
   0x6   :  { %327 = vmatpush3.bf16.msra.mxu0 %v326_v5 }
   0x7   :  { %328 = vmatprep.subr.bf16.mxu0 %v373_v4 }
   0x8   :  { %14 = vsyncpa [#allocation4], 0  ;;  %333 = vmatpush3.bf16.msra.mxu1 %v332_v13  ;;  %v335_v14 = vpack.c.bf16 %v119_v11, %v118_v10  ;;  %v120_v15 = vld [vmem:[%s486_s3 + $0x20] sm:$0xff]  ;;  %v121_v16 = vld [vmem:[%s486_s3 + $0x28] sm:$0xff]  ;;  %vm41_vm1 = vcmask 261120   ;;  %vm131_vm2 = vcmask 523264   ;;  %v255_v38 = vlaneseq }
   0x9   :  { %334 = vmatprep.subr.bf16.mxu1 %v373_v4  ;;  %v29_v17 = vld [vmem:[%s483_s0] sm:$0xff]  ;;  %v338_v18 = vpack.c.bf16 %v121_v16, %v120_v15  ;;  %v122_v19 = vld [vmem:[%s486_s3 + $0x30] sm:$0xff]  ;;  %v123_v20 = vld [vmem:[%s486_s3 + $0x38] sm:$0xff]  ;;  %v376_v27 = vmov 0   ;;  %vm260_vm3 = vcmask 57344  }
   0xa   :  { %330 = vmatpush3.bf16.msra.mxu0 %v329_v12  ;;  %v341_v21 = vpack.c.bf16 %v123_v20, %v122_v19  ;;  %v276_v22 = vld [vmem:[%s485_s2] ss:$0 sm:$0xff]  ;;  %348 = vset.pattern.permute.xlu0 %v376_v27  ;;  %v256_v39 = vshrl.u32 %v255_v38, 7  ;;  %s377_s2 = smov [#allocation3]  }
   0xb   :  { %v278_v28 = vld [vmem:[%s487_s4] ss:$0 sm:$0xff]  ;;  %s268_s4 = sshll.u32 %s377_s2, 4  ;;  %s269_s4 = int_to_ptr.vmem [resolvable:$true] %s268_s4 }
   0xc   :  { %336 = vmatpush3.bf16.msra.mxu1 %v335_v14  ;;  %v280_v32 = vld [vmem:[%s488_s5] ss:$0 sm:$0xff]  ;;  %v257_v40 = vsub.s32 0, %v256_v39  ;;  %s349_s5 = scalar_lea.vmem %s269_s4, 16  ;;  %s353_s8 = scalar_lea.vmem %s269_s4, 32 }
   0xd   :  { %304 = vmatmul.mubr.msk.f32.vlgmr.msra.gmra.mrb[0].mxu0 %vm41_vm1, %v29_v17  ;;  %337 = vmatprep.subr.bf16.mxu1 %v373_v4  ;;  %v249_v36 = vld [vmem:[#allocation2] sm:$0x1]  ;;  %p350_p0 = scmp.ne.s32.totalorder %s269_s4, %s349_s5  ;;  %p354_p1 = scmp.lt.s32.totalorder %s269_s4, %s269_s4 }
   0xe   :  { %p355_p2 = scmp.lt.s32.totalorder %s353_s8, %s349_s5 }
  0x10   :  { %339 = vmatpush3.bf16.msra.mxu1 %v338_v18  ;;  %p356_p3 = por %p355_p2, %p354_p1 }
  0x11   :  { %340 = vmatprep.subr.bf16.mxu1 %v373_v4 }
  0x12   :  { %p357_p4 = pnand %p356_p3, %p350_p0 }
  0x14   :  { %342 = vmatpush3.bf16.msra.mxu1 %v341_v21 }
  0xe0   :  { %v111_v23 = vpop.f32.mrb[0].mxu0 }
  0xe1   :  { %v112_v24 = vadd.f32 %v276_v22, %v111_v23  ;;  %v305_v25 = vpop.f32.mrb[1].mxu0 }
  0xe3   :  { %v115_v26 = vmax.f32 %v112_v24, 0.0 }
  0xe5   :  { %323 = vmatmul.mubr.msk.f32.vlgmr.msra.gmra.mrb[0].mxu1 %vm131_vm2, %v115_v26 }
 0x1b8   :  { %v201_v29 = vpop.f32.mrb[0].mxu1 }
 0x1b9   :  { %v202_v30 = vadd.f32 %v278_v28, %v201_v29  ;;  %v324_v31 = vpop.f32.mrb[1].mxu1 }
 0x1bb   :  { %v205_v33 = vmax.f32 %v202_v30, 0.0 }
 0x1bd   :  { %v213_v34 = vmul.f32 %v280_v32, %v205_v33 }
 0x1bf   :  { %v214_v35 = vsel %vm41_vm1, %v213_v34, 0.0 }
 0x1c0   :  { %215 = vadd.xlane.f32.xlu0 %v214_v35 }
 0x1d6   :  { %252 = vperm.xlu0 %348, %v249_v36  }
 0x24d   :  { %v216_v37 = vpop.xlane.xlu0 %215 }
 0x24e   :  { %217 = vxpose.xlu1.b32.start.end [1/1] (short) (narrow) %v216_v37, 8 }
 0x255   :  { %v253_v41 = vpop.permute.xlu0 %252 }
 0x256   :  { %v258_v42 = vrot.slane %v253_v41, %v257_v40 }
 0x2ce   :  { %v233_v43 = vpop.trf.xlu1 }
 0x2cf   :  { %v259_v44 = vadd.f32 %v258_v42, %v233_v43 }
 0x2d1   :  { %261 = vst.msk [vmem:[#allocation3] sm:$0x1] %vm260_vm3, %v259_v44 }
 0x2d2   :  { %360 = shalt.err (!%p357_p4)
}
 0x2d3   :  { %s361_s6 = scalar_lea.hbm %s490_s7, 16 }
 0x2d4   :  { %p362_p5 = scmp.ne.s32.totalorder %s490_s7, %s361_s6  ;;  %p365_p6 = scmp.lt.u32.totalorder %s361_s6, %s490_s7 }
 0x2d6   :  { %p367_p7 = pnand %p365_p6, %p362_p5 }
 0x2d8   :  { %370 = shalt.err (!%p367_p7)
}
 0x2d9   :  { %271 = dma.vmem_to_hbm [thread:$0]  %s269_s4, 16, %s490_s7, [#allocation4]  }
 0x2da   :  { %371 = dma.done.wait [#allocation4], 16  }
 0x2db   :  { %372 = vsyncadd [#allocation4], 4294967280 }
 0x2dc   :  { %275 = vsyncpa [#allocation4], 1 }

</bundles_post_ra>
